<compile_context>
chip_gen: v6e
topology: v6e:2x2x1
jax: 0.10.0
libtpu: 0.0.40
codegen_flags: <defaults>
</compile_context>

<pallas_src>
import numpy as np
import jax
import jax.numpy as jnp
from jax.experimental import pallas as pl
from jax.experimental.pallas import tpu as pltpu

_NUM_HOURS = 24
_NUM_DAYS = 7
_TABLE_ROWS = 32            # 24 hour rows + 7 day rows + 1 zero pad (sublane aligned)


def _temporal_embedding_kernel(idx_ref, pe_ref, table_ref, out_ref):
    ts = out_ref.shape[0]                       # rows in this seq tile (static)

    idx = idx_ref[...]                          # (ts, 2) int32: [:,0]=hour, [:,1]=day
    hours = idx[:, 0:1]                         # (ts, 1)
    days = idx[:, 1:2]                          # (ts, 1)

    # Single fused one-hot gather on the MXU: (ts, 32) @ (32, Dt).
    col = jax.lax.broadcasted_iota(jnp.int32, (ts, _TABLE_ROWS), 1)
    onehot = ((col == hours) | (col == (days + _NUM_HOURS))).astype(jnp.float32)
    emb = jnp.dot(onehot, table_ref[...], preferred_element_type=jnp.float32)

    out_ref[...] = pe_ref[...] + emb


def make_sinusoidal_pe(max_len, d_model):
    """Matches the PyTorch buffer built in __init__."""
    position = np.arange(max_len, dtype=np.float32)[:, None]
    div_term = np.exp(np.arange(0, d_model, 2, dtype=np.float32)
                      * (-np.log(10000.0) / d_model))
    pe = np.zeros((max_len, d_model), dtype=np.float32)
    pe[:, 0::2] = np.sin(position * div_term)
    pe[:, 1::2] = np.cos(position * div_term)
    return jnp.asarray(pe)


def _round_up(x, m):
    return ((x + m - 1) // m) * m


def _choose_tiles(S, D):
    """Pick (seq_tile, d_tile) for lane-dense ~2 MiB f32 blocks."""
    # D tile: full D unless very large; keep it a multiple of 128 (lane dense).
    if D > 2048 and D % 128 == 0:
        dt = 2048
    else:
        dt = D
    # Seq tile: target ~2 MiB per (ts, dt) f32 block so the ~0.35us per-step
    # overhead is amortised, while double-buffered pe+out blocks stay far below
    # even v5e's 16 MiB scoped-VMEM default and v7x's 64 MiB physical VMEM.
    target_bytes = 2 << 20
    ts = max(8, (target_bytes // (4 * dt)) // 8 * 8)
    s_pad = _round_up(S, 8)
    ts = min(ts, s_pad)
    # Guarantee >= 2 seq steps when there is enough work, so the "parallel"
    # grid axis can be sharded across both TensorCores on v7x.
    if pl.cdiv(S, ts) < 2 and s_pad >= 128:
        ts = _round_up(pl.cdiv(s_pad, 2), 8)
    return ts, dt


def temporal_embedding(hours, days, pe, hour_emb, day_emb):
    """hours, days: (S,) int32;  pe: (max_len, D);  returns (S, D) float32."""
    S = int(hours.shape[0])
    max_len, D = int(pe.shape[0]), int(pe.shape[1])
    assert S <= max_len, "seq_len exceeds positional-encoding max_len"

    ts, dt = _choose_tiles(S, D)
    n_seq = pl.cdiv(S, ts)
    n_d = pl.cdiv(D, dt)

    # Pack the two tiny index vectors into one (S, 2) input: one DMA per tile.
    idx = jnp.stack([hours.astype(jnp.int32), days.astype(jnp.int32)], axis=1)

    # Fuse hour/day tables into one sublane-aligned (32, D) table
    # (rows 0..23 = hours, 24..30 = days, 31 = zeros).
    table = jnp.concatenate(
        [hour_emb.astype(jnp.float32),
         day_emb.astype(jnp.float32),
         jnp.zeros((_TABLE_ROWS - _NUM_HOURS - _NUM_DAYS, D), jnp.float32)],
        axis=0)

    # Explicit VMEM budget (double-buffered idx/pe/out blocks + table), capped
    # safely below v7x's 64 MiB physical VMEM per TensorCore.
    block_bytes = 4 * ts * dt
    vmem_need = 2 * (2 * block_bytes + 4 * ts * 2 + 4 * _TABLE_ROWS * dt)
    vmem_limit = int(min(max(2 * vmem_need, 32 << 20), 60 << 20))

    return pl.pallas_call(
        _temporal_embedding_kernel,
        out_shape=jax.ShapeDtypeStruct((S, D), jnp.float32),
        grid=(n_d, n_seq),
        in_specs=[
            # packed (hour, day) indices: only the seq axis matters
            pl.BlockSpec((ts, 2), lambda j, i: (i, 0)),
            # full pe buffer — the pe[:S] slice is implicit via the grid extent
            pl.BlockSpec((ts, dt), lambda j, i: (i, j)),
            # fused embedding table: constant over the (inner) seq axis
            pl.BlockSpec((_TABLE_ROWS, dt), lambda j, i: (0, j)),
        ],
        out_specs=pl.BlockSpec((ts, dt), lambda j, i: (i, j)),
        compiler_params=pltpu.CompilerParams(
            dimension_semantics=("parallel", "parallel"),
            vmem_limit_bytes=vmem_limit),
    )(idx, pe, table)


def _reference(hours, days, pe, hour_emb, day_emb):
    S = hours.shape[0]
    return pe[:S] + hour_emb[hours] + day_emb[days]


if __name__ == "__main__":
    key = jax.random.PRNGKey(0)
    k_h, k_d, k_he, k_de = jax.random.split(key, 4)

    # --- small shapes consistent with the module: seq=8, d_model=32 -----------
    max_len, d_model, seq_len = 16, 32, 8

    # Host-side stand-in for [ts.hour for ts in timestamps] / [ts.weekday() ...]
    hours = jax.random.randint(k_h, (seq_len,), 0, _NUM_HOURS, dtype=jnp.int32)
    days = jax.random.randint(k_d, (seq_len,), 0, _NUM_DAYS, dtype=jnp.int32)

    hour_emb = jax.random.normal(k_he, (_NUM_HOURS, d_model), jnp.float32)
    day_emb = jax.random.normal(k_de, (_NUM_DAYS, d_model), jnp.float32)
    pe = make_sinusoidal_pe(max_len, d_model)

    out = jax.block_until_ready(temporal_embedding(hours, days, pe, hour_emb, day_emb))
    ref = _reference(hours, days, pe, hour_emb, day_emb)
    assert out.shape == (seq_len, d_model)
    assert jnp.allclose(out, ref, atol=1e-5, rtol=1e-5), "Pallas kernel mismatch vs reference"

    # --- ragged / multi-step check: S not a tile multiple, 2 parallel seq steps
    max_len2, d_model2, seq_len2 = 256, 128, 200
    h2 = jax.random.randint(k_h, (seq_len2,), 0, _NUM_HOURS, dtype=jnp.int32)
    d2 = jax.random.randint(k_d, (seq_len2,), 0, _NUM_DAYS, dtype=jnp.int32)
    he2 = jax.random.normal(k_he, (_NUM_HOURS, d_model2), jnp.float32)
    de2 = jax.random.normal(k_de, (_NUM_DAYS, d_model2), jnp.float32)
    pe2 = make_sinusoidal_pe(max_len2, d_model2)

    out2 = jax.block_until_ready(temporal_embedding(h2, d2, pe2, he2, de2))
    ref2 = _reference(h2, d2, pe2, he2, de2)
    assert out2.shape == (seq_len2, d_model2)
    assert jnp.allclose(out2, ref2, atol=1e-5, rtol=1e-5), "Pallas kernel mismatch (ragged/multi-step)"

    print("KERNEL_OK")
</pallas_src>

<mosaic_0001>
module attributes {stable_mosaic.version = 11 : i64} {
  func.func @_temporal_embedding_kernel(%arg0: i32, %arg1: i32, %arg2: memref<8x2xi32, #tpu.memory_space<vmem>>, %arg3: memref<8x32xf32, #tpu.memory_space<vmem>>, %arg4: memref<32x32xf32, #tpu.memory_space<vmem>>, %arg5: memref<8x32xf32, #tpu.memory_space<vmem>>) attributes {dimension_semantics = [#tpu.dimension_semantics<parallel>, #tpu.dimension_semantics<parallel>], iteration_bounds = array<i64: 1, 1>, scalar_prefetch = 0 : i64, scratch_operands = 0 : i64, tpu.core_type = #tpu.core_type<tc>, window_params = [{transform_indices = @transform_0, window_bounds = array<i64: 8, 2>}, {transform_indices = @transform_1, window_bounds = array<i64: 8, 32>}, {transform_indices = @transform_2, window_bounds = array<i64: 32, 32>}, {transform_indices = @transform_3, window_bounds = array<i64: 8, 32>}]} {
    %c0 = arith.constant 0 : index
    %c0_0 = arith.constant 0 : index
    %0 = vector.load %arg2[%c0, %c0_0] : memref<8x2xi32, #tpu.memory_space<vmem>>, vector<8x2xi32>
    %1 = vector.extract_strided_slice %0 {offsets = [0, 0], sizes = [8, 1], strides = [1, 1]} : vector<8x2xi32> to vector<8x1xi32>
    %2 = vector.extract_strided_slice %0 {offsets = [0, 1], sizes = [8, 1], strides = [1, 1]} : vector<8x2xi32> to vector<8x1xi32>
    %3 = tpu.iota {dimensions = array<i32: 1>} : vector<8x32xi32>
    %4 = vector.broadcast %1 : vector<8x1xi32> to vector<8x32xi32>
    %5 = arith.cmpi eq, %3, %4 : vector<8x32xi32>
    %c24_i32 = arith.constant 24 : i32
    %6 = vector.broadcast %c24_i32 : i32 to vector<8x1xi32>
    %7 = arith.addi %2, %6 : vector<8x1xi32>
    %8 = vector.broadcast %7 : vector<8x1xi32> to vector<8x32xi32>
    %9 = arith.cmpi eq, %3, %8 : vector<8x32xi32>
    %10 = arith.ori %5, %9 : vector<8x32xi1>
    %11 = arith.extui %10 : vector<8x32xi1> to vector<8x32xi32>
    %12 = arith.sitofp %11 : vector<8x32xi32> to vector<8x32xf32>
    %c0_1 = arith.constant 0 : index
    %c0_2 = arith.constant 0 : index
    %13 = vector.load %arg4[%c0_1, %c0_2] : memref<32x32xf32, #tpu.memory_space<vmem>>, vector<32x32xf32>
    %cst = arith.constant dense<0.000000e+00> : vector<8x32xf32>
    %14 = tpu.matmul %12, %13, %cst {dimension_numbers = #tpu.dot_dimension_numbers<[1], [0], [0], [1], [0, 0, 1, 1], [], []>} : vector<8x32xf32>, vector<32x32xf32>, vector<8x32xf32> -> vector<8x32xf32>
    %c0_3 = arith.constant 0 : index
    %c0_4 = arith.constant 0 : index
    %15 = vector.load %arg3[%c0_3, %c0_4] : memref<8x32xf32, #tpu.memory_space<vmem>>, vector<8x32xf32>
    %16 = arith.addf %15, %14 : vector<8x32xf32>
    %c0_5 = arith.constant 0 : index
    %c0_6 = arith.constant 0 : index
    %17 = vector.load %arg5[%c0_5, %c0_6] : memref<8x32xf32, #tpu.memory_space<vmem>>, vector<8x32xf32>
    tpu.vector_store %arg5[%c0_5, %c0_6], %16 {strides = array<i32>} : memref<8x32xf32, #tpu.memory_space<vmem>>, vector<8x32xf32>,
    return
  }
  func.func @transform_0(%arg0: i32, %arg1: i32) -> (i32, i32) {
    %c0_i32 = arith.constant 0 : i32
    %c0_i32_0 = arith.constant 0 : i32
    return %arg1, %c0_i32 : i32, i32
  }
  func.func @transform_1(%arg0: i32, %arg1: i32) -> (i32, i32) {
    %c0_i32 = arith.constant 0 : i32
    return %arg1, %arg0 : i32, i32
  }
  func.func @transform_2(%arg0: i32, %arg1: i32) -> (i32, i32) {
    %c0_i32 = arith.constant 0 : i32
    %c0_i32_0 = arith.constant 0 : i32
    return %c0_i32, %arg0 : i32, i32
  }
  func.func @transform_3(%arg0: i32, %arg1: i32) -> (i32, i32) {
    %c0_i32 = arith.constant 0 : i32
    return %arg1, %arg0 : i32, i32
  }
}

</mosaic_0001>

<bundles_post_ra>
// kernel: tpu_custom_call.1
= control target key start
LH: loop header
LB: loop body
LE: loop exit
PB: predicated region body
PF: predicated region fallthrough
CT: control target
= control target key end

     0   :  { %8 = vsyncpa [#allocation3], 0  ;;  %s289_s0 = inlined_call_operand.vmem [shape: s32[8,2], index: 0, kind: input, shape index: {}]   ;;  %s290_s1 = inlined_call_operand.hbm [shape: f32[16,32], index: 1, kind: input, shape index: {}]   ;;  %s291_s2 = inlined_call_operand.hbm [shape: f32[32,32], index: 2, kind: input, shape index: {}]   ;;  %s292_s3 = inlined_call_operand.hbm [shape: f32[8,32], index: 3, kind: output, shape index: {}]  }
   0x1   :  { %9 = vsyncpa [#allocation6], 0 }
   0x2   :  { %10 = vsyncpa [#allocation4], 0  ;;  %s248_s12 = smov [#allocation2]   ;;  %s249_s14 = smov [#allocation5]  }
   0x3   :  { %s19_s13 = sshll.u32 %s248_s12, 4  ;;  %s28_s15 = sshll.u32 %s249_s14, 4  ;;  %s20_s13 = int_to_ptr.vmem [resolvable:$true] %s19_s13  ;;  %s29_s15 = int_to_ptr.vmem [resolvable:$true] %s28_s15 }
   0x4   :  { %s190_s16 = scalar_lea.vmem %s20_s13, 128  ;;  %p195_p1 = scmp.lt.s32.totalorder %s20_s13, %s20_s13 }
   0x5   :  { %p191_p0 = scmp.ne.s32.totalorder %s20_s13, %s190_s16  ;;  %p196_p2 = scmp.lt.s32.totalorder %s190_s16, %s190_s16 }
   0x7   :  { %p197_p3 = por %p196_p2, %p195_p1 }
   0x9   :  { %p198_p4 = pnand %p197_p3, %p191_p0 }
   0xb   :  { %201 = shalt.err (!%p198_p4)
}
   0xc   :  { %22 = dma.hbm_to_vmem [thread:$0]  %s290_s1, 128, %s20_s13, [#allocation3]  }
   0xd   :  { %s210_s19 = scalar_lea.vmem %s29_s15, 512  ;;  %p215_p6 = scmp.lt.s32.totalorder %s29_s15, %s29_s15 }
   0xe   :  { %p211_p5 = scmp.ne.s32.totalorder %s29_s15, %s210_s19  ;;  %p216_p7 = scmp.lt.s32.totalorder %s210_s19, %s210_s19 }
  0x10   :  { %p217_p8 = por %p216_p7, %p215_p6 }
  0x12   :  { %p218_p9 = pnand %p217_p8, %p211_p5 }
  0x14   :  { %221 = shalt.err (!%p218_p9)
}
  0x15   :  { %s250_s20 = smov 128   ;;  %s251_s21 = smov 8  }
  0x16   :  { %34 = dma.hbm_to_vmem [thread:$0]  %s291_s2, 512, %s29_s15, [#allocation6], %s250_s20, %s250_s20, %s251_s21  }
  0x17   :  { %242 = dma.done.wait [#allocation3], 128  }
  0x18   :  { %243 = vsyncadd [#allocation3], 4294967168 }
  0x19   :  { %244 = dma.done.wait [#allocation6], 512  }
  0x1a   :  { %245 = vsyncadd [#allocation6], 4294966784  ;;  %v252_v0 = vmov 0   ;;  %v253_v1 = vmov 0.0   ;;  %v41_v2 = vld [vmem:[%s289_s0] sm:$0xff]  ;;  %v58_v4 = vld [vmem:[#allocation5 + $0x10] sm:$0xff]  ;;  %v42_v9 = vlaneseq }
  0x1b   :  { %180 = vset.pattern.permute.xlu0 %v252_v0  ;;  %160 = vmatprep.subr.mxu0 %v253_v1  ;;  %v59_v3 = vld [vmem:[#allocation5 + $0x18] sm:$0xff]  ;;  %v48_v5 = vadd.s32 24, %v41_v2  ;;  %v57_v6 = vld [vmem:[#allocation5 + $0x8] sm:$0xff]  ;;  %v56_v7 = vld [vmem:[#allocation5] sm:$0xff]  ;;  %vm254_vm0 = vmmov 0   ;;  %v255_v8 = vmov 1  }
  0x1c   :  { %45 = vperm.xlu0 %180, %v41_v2   ;;  %161 = vmatpush3.msra.mxu0 %v59_v3  ;;  %v43_v11 = vand.u32 127, %v42_v9  ;;  %vm60_vm3 = vcmask 261120   ;;  %v134_v14 = vld [vmem:[#allocation2] sm:$0xff]  ;;  %s256_s0 = smov [#allocation7]  }
  0x1d   :  { %162 = vmatprep.subr.mxu0 %v253_v1  ;;  %168 = vmatprep.mubr.msk.f32.mxu0 %vm254_vm0, %v253_v1  ;;  %s143_s2 = sshll.u32 %s256_s0, 4  ;;  %s144_s2 = int_to_ptr.vmem [resolvable:$true] %s143_s2 }
  0x1e   :  { %163 = vmatpush3.msra.mxu0 %v58_v4  ;;  %s222_s25 = scalar_lea.vmem %s144_s2, 128  ;;  %p227_p11 = scmp.lt.s32.totalorder %s144_s2, %s144_s2 }
  0x1f   :  { %164 = vmatprep.subr.mxu0 %v253_v1  ;;  %p223_p10 = scmp.ne.s32.totalorder %s144_s2, %s222_s25  ;;  %p228_p12 = scmp.lt.s32.totalorder %s222_s25, %s222_s25 }
  0x20   :  { %181 = vset.pattern.permute.xlu0 %v255_v8  ;;  %165 = vmatpush3.msra.mxu0 %v57_v6 }
  0x21   :  { %50 = vperm.xlu0 %181, %v48_v5   ;;  %166 = vmatprep.subr.mxu0 %v253_v1  ;;  %p229_p13 = por %p228_p12, %p227_p11 }
  0x22   :  { %167 = vmatpush3.msra.mxu0 %v56_v7 }
  0x23   :  { %p230_p0 = pnand %p229_p13, %p223_p10 }
  0x97   :  { %v46_v10 = vpop.permute.xlu0 %45 }
  0x98   :  { %vm47_vm1 = vcmp.eq.s32.totalorder %v43_v11, %v46_v10 }
  0x9c   :  { %v51_v12 = vpop.permute.xlu0 %50 }
  0x9d   :  { %vm52_vm2 = vcmp.eq.s32.totalorder %v43_v11, %v51_v12 }
  0x9e   :  { %vm53_vm4 = vmor %vm47_vm1, %vm52_vm2 }
  0x9f   :  { %v153_v13 = vsel %vm53_vm4, 1.0, %v253_v1 }
  0xa0   :  { %169 = vmatmul.mubr.msk.f32.vlgmr.msra.gmra.mxu0 %vm60_vm3, %v153_v13 }
 0x160   :  { %v130_v15 = vpop.f32.mrf.mxu0 }
 0x161   :  { %v135_v16 = vadd.f32 %v134_v14, %v130_v15 }
 0x162   :  { %v170_v17 = vpop.f32.mrf.mxu0 }
 0x163   :  { %136 = vst.msk [vmem:[#allocation7] sm:$0xff] %vm60_vm3, %v135_v16 }
 0x164   :  { %233 = shalt.err (!%p230_p0)
}
 0x165   :  { %146 = dma.vmem_to_hbm [thread:$0]  %s144_s2, 128, %s292_s3, [#allocation4]  }
 0x166   :  { %246 = dma.done.wait [#allocation4], 128  }
 0x167   :  { %247 = vsyncadd [#allocation4], 4294967168 }
 0x168   :  { %150 = vsyncpa [#allocation3], 1 }
 0x169   :  { %151 = vsyncpa [#allocation6], 1 }
 0x16a   :  { %152 = vsyncpa [#allocation4], 1 }

</bundles_post_ra>
